<compile_context>
chip_gen: v5e
topology: v5e:2x2
jax: 0.10.0
libtpu: 0.0.40
codegen_flags: <defaults>
</compile_context>

<pallas_src>
import functools

import numpy as np
import jax
import jax.numpy as jnp
from jax.experimental import pallas as pl
from jax.experimental.pallas import tpu as pltpu


def _dwconv_bn_relu_kernel(x_ref, wb_ref, o_ref, *, h, w):
    # x_ref:  (1, c_blk, H*W)  flattened input plane block
    # wb_ref: (c_blk, 16)      f32: cols 0..8 = BN-folded 3x3 taps, col 9 = bias
    # o_ref:  (1, c_blk, H*W)  flattened stride-1 output plane block
    hw = h * w

    # Single f32 convert of the whole block (taps reuse it 9 times).
    x = x_ref[0].astype(jnp.float32)                       # (c_blk, hw)

    # Edge masks from a flat iota (computed once per grid step).
    idx = jax.lax.broadcasted_iota(jnp.int32, (1, hw), 1)
    col = idx % w
    left_edge = col == 0                                   # ow == 0
    right_edge = col == (w - 1)                            # ow == W-1
    top_edge = idx < w                                     # oh == 0
    bot_edge = idx >= (h - 1) * w                          # oh == H-1
    zero = jnp.zeros((), jnp.float32)

    # Column-shifted variants via XLU rolls (non-negative static shifts) + masks.
    # x_l[p] = X[oh, ow-1], x_r[p] = X[oh, ow+1] (zero-padded borders).
    x_l = jnp.where(left_edge, zero, pltpu.roll(x, 1, axis=1))
    x_r = jnp.where(right_edge, zero, pltpu.roll(x, hw - 1, axis=1))

    def tap(k):                                            # (c_blk, 1) f32
        return wb_ref[:, k:k + 1]

    # Per-kh row sums: s_kh[oh, ow] = sum_kw w[kh,kw] * X[oh, ow+kw-1].
    s0 = tap(0) * x_l + tap(1) * x + tap(2) * x_r          # kh = 0
    s1 = tap(3) * x_l + tap(4) * x + tap(5) * x_r          # kh = 1
    s2 = tap(6) * x_l + tap(7) * x + tap(8) * x_r          # kh = 2

    # out[oh] = s0[oh-1] + s1[oh] + s2[oh+1]  (rows shifted via flat rolls by W).
    acc = s1
    acc = acc + jnp.where(top_edge, zero, pltpu.roll(s0, w, axis=1))
    acc = acc + jnp.where(bot_edge, zero, pltpu.roll(s2, hw - w, axis=1))

    bias = wb_ref[:, 9:10]                                 # (c_blk, 1) f32
    o_ref[0] = jnp.maximum(acc + bias, 0.0).astype(o_ref.dtype)


def _vmem_limit_bytes():
    """Per-generation VMEM limit (v5e/v6e: ~100 MiB; v7x / unknown: 48 MiB)."""
    phys = 64 * 1024 * 1024
    try:
        phys = int(pltpu.get_tpu_info().vmem_capacity_bytes)
    except Exception:
        pass
    return int(min(max(phys - 16 * 1024 * 1024, 32 * 1024 * 1024),
                   100 * 1024 * 1024))


def _pick_c_blk(c, n, hw, in_itemsize, out_itemsize, budget_bytes):
    """Largest channel block that fits the VMEM budget and keeps >=2 parallel blocks."""
    # Double-buffered in/out blocks + ~6 live f32 plane temps + weight tile.
    per_c = hw * (2 * in_itemsize + 2 * out_itemsize + 6 * 4) + 1024
    divisors = [d for d in range(1, c + 1) if c % d == 0]
    # Respect the (8,128) rule on the second-to-last block dim: multiple of 8 or full C.
    cands = [d for d in divisors if d % 8 == 0 or d == c] or divisors
    fits = [d for d in cands if d * per_c <= budget_bytes]
    c_blk = max(fits) if fits else min(cands)
    # v7x megacore: avoid a degenerate parallel extent of 1 when we can split.
    if n * (c // c_blk) < 2:
        smaller = ([d for d in cands if d < c_blk and d * per_c <= budget_bytes]
                   or [d for d in divisors if d < c_blk])
        if smaller:
            c_blk = max(smaller)
    return c_blk


def dwconv_bn_relu(x_nchw, weight, gamma, beta, running_mean, running_var,
                   *, stride=1, eps=1e-5):
    """DWConv forward: Conv2d(3x3, pad=1, groups=C, bias=False) + BN(eval) + ReLU.

    x_nchw: (N, C, H, W);  weight: (C, 1, 3, 3).  Returns (N, C, Ho, Wo) in NCHW.
    """
    n, c, h, w = x_nchw.shape
    assert weight.shape == (c, 1, 3, 3), "kernel assumes out_channels == dw_channels"
    hw = h * w

    # Fold BatchNorm (eval) into the conv weights (kept in f32 — see review note),
    # and pack taps + bias into a single (C, 16) operand: cols 0..8 taps, col 9 bias.
    scale = (gamma.astype(jnp.float32) /
             jnp.sqrt(running_var.astype(jnp.float32) + eps))             # (C,)
    bias = beta.astype(jnp.float32) - running_mean.astype(jnp.float32) * scale
    w_folded = weight[:, 0].astype(jnp.float32) * scale[:, None, None]    # (C,3,3)
    wb = jnp.zeros((c, 16), jnp.float32)
    wb = wb.at[:, 0:9].set(w_folded.reshape(c, 9))
    wb = wb.at[:, 9].set(bias)

    in_itemsize = np.dtype(x_nchw.dtype).itemsize
    out_itemsize = in_itemsize
    vmem_limit = _vmem_limit_bytes()
    c_blk = _pick_c_blk(c, n, hw, in_itemsize, out_itemsize, vmem_limit // 2)

    # Metadata-only reshape (NCHW is row-contiguous): lane-dense flattened slabs.
    x_flat = x_nchw.reshape(n, c, hw)

    kernel = functools.partial(_dwconv_bn_relu_kernel, h=h, w=w)

    y_flat = pl.pallas_call(
        kernel,
        out_shape=jax.ShapeDtypeStruct((n, c, hw), x_nchw.dtype),
        grid_spec=pltpu.PrefetchScalarGridSpec(
            num_scalar_prefetch=0,
            grid=(n, c // c_blk),
            in_specs=[
                pl.BlockSpec((1, c_blk, hw), lambda b, cb: (b, cb, 0)),
                pl.BlockSpec((c_blk, 16), lambda b, cb: (cb, 0)),
            ],
            out_specs=pl.BlockSpec((1, c_blk, hw), lambda b, cb: (b, cb, 0)),
        ),
        compiler_params=pltpu.CompilerParams(
            dimension_semantics=("parallel", "parallel"),
            vmem_limit_bytes=vmem_limit,
        ),
    )(x_flat, wb)

    y = y_flat.reshape(n, c, h, w)
    if stride > 1:
        # Decimating the stride-1 output of a pad-1 3x3 conv IS the strided conv.
        # TODO(synk): move the decimation into the kernel to skip wasted compute.
        y = y[:, :, ::stride, ::stride]
    return y


def _reference(x_nchw, weight, gamma, beta, running_mean, running_var,
               *, stride=1, eps=1e-5):
    """Pure-JAX reference (lax conv) for correctness checking."""
    c = x_nchw.shape[1]
    y = jax.lax.conv_general_dilated(
        x_nchw, weight,
        window_strides=(stride, stride),
        padding=((1, 1), (1, 1)),
        feature_group_count=c,
        dimension_numbers=("NCHW", "OIHW", "NCHW"),
    )
    scale = (gamma / jnp.sqrt(running_var + eps)).reshape(1, c, 1, 1)
    bias = beta.reshape(1, c, 1, 1) - running_mean.reshape(1, c, 1, 1) * scale
    return jnp.maximum(y * scale + bias, 0.0)


if __name__ == "__main__":
    key = jax.random.PRNGKey(0)
    k_x, k_w, k_g, k_b, k_m, k_v = jax.random.split(key, 6)

    N, C, H, W = 2, 4, 16, 16
    x = jax.random.normal(k_x, (N, C, H, W), dtype=jnp.float32)
    weight = jax.random.normal(k_w, (C, 1, 3, 3), dtype=jnp.float32) * 0.2
    gamma = 1.0 + 0.1 * jax.random.normal(k_g, (C,), dtype=jnp.float32)
    beta = 0.1 * jax.random.normal(k_b, (C,), dtype=jnp.float32)
    running_mean = 0.1 * jax.random.normal(k_m, (C,), dtype=jnp.float32)
    running_var = 1.0 + 0.1 * jax.random.uniform(k_v, (C,), dtype=jnp.float32)

    ok = True
    for stride in (1, 2):
        out = dwconv_bn_relu(x, weight, gamma, beta, running_mean, running_var,
                             stride=stride)
        out = jax.block_until_ready(out)
        ref = _reference(x, weight, gamma, beta, running_mean, running_var,
                         stride=stride)
        assert out.shape == ref.shape, (stride, out.shape, ref.shape)
        assert jnp.allclose(out, ref, atol=1e-4, rtol=1e-4), \
            f"mismatch vs reference at stride={stride}"

    if ok:
        print("KERNEL_OK")
</pallas_src>

<mosaic_0001>
module attributes {stable_mosaic.version = 11 : i64} {
  func.func @_dwconv_bn_relu_kernel(%arg0: i32, %arg1: i32, %arg2: memref<1x4x256xf32, #tpu.memory_space<vmem>>, %arg3: memref<4x16xf32, #tpu.memory_space<vmem>>, %arg4: memref<1x4x256xf32, #tpu.memory_space<vmem>>) attributes {dimension_semantics = [#tpu.dimension_semantics<parallel>, #tpu.dimension_semantics<parallel>], iteration_bounds = array<i64: 2, 1>, scalar_prefetch = 0 : i64, scratch_operands = 0 : i64, tpu.core_type = #tpu.core_type<tc>, window_params = [{transform_indices = @transform_0, window_bounds = array<i64: 1, 4, 256>}, {transform_indices = @transform_1, window_bounds = array<i64: 4, 16>}, {transform_indices = @transform_2, window_bounds = array<i64: 1, 4, 256>}]} {
    %c0 = arith.constant 0 : index
    %c0_0 = arith.constant 0 : index
    %c0_1 = arith.constant 0 : index
    %0 = vector.load %arg2[%c0, %c0_0, %c0_1] : memref<1x4x256xf32, #tpu.memory_space<vmem>>, vector<1x4x256xf32>
    %1 = vector.shape_cast %0 : vector<1x4x256xf32> to vector<4x256xf32>
    %2 = tpu.iota {dimensions = array<i32: 1>} : vector<1x256xi32>
    %c16_i32 = arith.constant 16 : i32
    %c0_i32 = arith.constant 0 : i32
    %3 = arith.cmpi eq, %c16_i32, %c0_i32 : i32
    %c1_i32 = arith.constant 1 : i32
    %4 = arith.select %3, %c1_i32, %c16_i32 : i32
    %5 = vector.broadcast %4 : i32 to vector<1x256xi32>
    %6 = arith.remsi %2, %5 : vector<1x256xi32>
    %c0_i32_2 = arith.constant 0 : i32
    %7 = vector.broadcast %c0_i32_2 : i32 to vector<1x256xi32>
    %8 = arith.cmpi ne, %6, %7 : vector<1x256xi32>
    %c0_i32_3 = arith.constant 0 : i32
    %9 = vector.broadcast %c0_i32_3 : i32 to vector<1x256xi32>
    %10 = arith.cmpi slt, %6, %9 : vector<1x256xi32>
    %c0_i32_4 = arith.constant 0 : i32
    %11 = arith.cmpi slt, %4, %c0_i32_4 : i32
    %12 = vector.broadcast %11 : i1 to vector<1x256xi1>
    %13 = vector.broadcast %12 : vector<1x256xi1> to vector<1x256xi1>
    %14 = arith.xori %10, %13 : vector<1x256xi1>
    %15 = arith.andi %14, %8 : vector<1x256xi1>
    %16 = vector.broadcast %4 : i32 to vector<1x256xi32>
    %17 = arith.addi %6, %16 : vector<1x256xi32>
    %18 = arith.select %15, %17, %6 : vector<1x256xi1>, vector<1x256xi32>
    %c0_i32_5 = arith.constant 0 : i32
    %19 = vector.broadcast %c0_i32_5 : i32 to vector<1x256xi32>
    %20 = arith.cmpi eq, %18, %19 : vector<1x256xi32>
    %c15_i32 = arith.constant 15 : i32
    %21 = vector.broadcast %c15_i32 : i32 to vector<1x256xi32>
    %22 = arith.cmpi eq, %18, %21 : vector<1x256xi32>
    %c16_i32_6 = arith.constant 16 : i32
    %23 = vector.broadcast %c16_i32_6 : i32 to vector<1x256xi32>
    %24 = arith.cmpi slt, %2, %23 : vector<1x256xi32>
    %c240_i32 = arith.constant 240 : i32
    %25 = vector.broadcast %c240_i32 : i32 to vector<1x256xi32>
    %26 = arith.cmpi sge, %2, %25 : vector<1x256xi32>
    %c1_i32_7 = arith.constant 1 : i32
    %27 = tpu.dynamic_rotate %1 by %c1_i32_7 dim 1 : vector<4x256xf32>, i32 -> vector<4x256xf32>
    %cst = arith.constant 0.000000e+00 : f32
    %28 = vector.shape_cast %20 : vector<1x256xi1> to vector<1x256xi1>
    %29 = vector.broadcast %28 : vector<1x256xi1> to vector<4x256xi1>
    %30 = vector.broadcast %cst : f32 to vector<4x256xf32>
    %31 = arith.select %29, %30, %27 : vector<4x256xi1>, vector<4x256xf32>
    %c255_i32 = arith.constant 255 : i32
    %32 = tpu.dynamic_rotate %1 by %c255_i32 dim 1 : vector<4x256xf32>, i32 -> vector<4x256xf32>
    %cst_8 = arith.constant 0.000000e+00 : f32
    %33 = vector.shape_cast %22 : vector<1x256xi1> to vector<1x256xi1>
    %34 = vector.broadcast %33 : vector<1x256xi1> to vector<4x256xi1>
    %35 = vector.broadcast %cst_8 : f32 to vector<4x256xf32>
    %36 = arith.select %34, %35, %32 : vector<4x256xi1>, vector<4x256xf32>
    %c0_9 = arith.constant 0 : index
    %c0_10 = arith.constant 0 : index
    %37 = vector.load %arg3[%c0_9, %c0_10] : memref<4x16xf32, #tpu.memory_space<vmem>>, vector<4x1xf32>
    %38 = vector.broadcast %37 : vector<4x1xf32> to vector<4x256xf32>
    %39 = arith.mulf %38, %31 : vector<4x256xf32>
    %c0_11 = arith.constant 0 : index
    %c1 = arith.constant 1 : index
    %40 = vector.load %arg3[%c0_11, %c1] : memref<4x16xf32, #tpu.memory_space<vmem>>, vector<4x1xf32>
    %41 = vector.broadcast %40 : vector<4x1xf32> to vector<4x256xf32>
    %42 = arith.mulf %41, %1 : vector<4x256xf32>
    %43 = arith.addf %39, %42 : vector<4x256xf32>
    %c0_12 = arith.constant 0 : index
    %c2 = arith.constant 2 : index
    %44 = vector.load %arg3[%c0_12, %c2] : memref<4x16xf32, #tpu.memory_space<vmem>>, vector<4x1xf32>
    %45 = vector.broadcast %44 : vector<4x1xf32> to vector<4x256xf32>
    %46 = arith.mulf %45, %36 : vector<4x256xf32>
    %47 = arith.addf %43, %46 : vector<4x256xf32>
    %c0_13 = arith.constant 0 : index
    %c3 = arith.constant 3 : index
    %48 = vector.load %arg3[%c0_13, %c3] : memref<4x16xf32, #tpu.memory_space<vmem>>, vector<4x1xf32>
    %49 = vector.broadcast %48 : vector<4x1xf32> to vector<4x256xf32>
    %50 = arith.mulf %49, %31 : vector<4x256xf32>
    %c0_14 = arith.constant 0 : index
    %c4 = arith.constant 4 : index
    %51 = vector.load %arg3[%c0_14, %c4] : memref<4x16xf32, #tpu.memory_space<vmem>>, vector<4x1xf32>
    %52 = vector.broadcast %51 : vector<4x1xf32> to vector<4x256xf32>
    %53 = arith.mulf %52, %1 : vector<4x256xf32>
    %54 = arith.addf %50, %53 : vector<4x256xf32>
    %c0_15 = arith.constant 0 : index
    %c5 = arith.constant 5 : index
    %55 = vector.load %arg3[%c0_15, %c5] : memref<4x16xf32, #tpu.memory_space<vmem>>, vector<4x1xf32>
    %56 = vector.broadcast %55 : vector<4x1xf32> to vector<4x256xf32>
    %57 = arith.mulf %56, %36 : vector<4x256xf32>
    %58 = arith.addf %54, %57 : vector<4x256xf32>
    %c0_16 = arith.constant 0 : index
    %c6 = arith.constant 6 : index
    %59 = vector.load %arg3[%c0_16, %c6] : memref<4x16xf32, #tpu.memory_space<vmem>>, vector<4x1xf32>
    %60 = vector.broadcast %59 : vector<4x1xf32> to vector<4x256xf32>
    %61 = arith.mulf %60, %31 : vector<4x256xf32>
    %c0_17 = arith.constant 0 : index
    %c7 = arith.constant 7 : index
    %62 = vector.load %arg3[%c0_17, %c7] : memref<4x16xf32, #tpu.memory_space<vmem>>, vector<4x1xf32>
    %63 = vector.broadcast %62 : vector<4x1xf32> to vector<4x256xf32>
    %64 = arith.mulf %63, %1 : vector<4x256xf32>
    %65 = arith.addf %61, %64 : vector<4x256xf32>
    %c0_18 = arith.constant 0 : index
    %c8 = arith.constant 8 : index
    %66 = vector.load %arg3[%c0_18, %c8] : memref<4x16xf32, #tpu.memory_space<vmem>>, vector<4x1xf32>
    %67 = vector.broadcast %66 : vector<4x1xf32> to vector<4x256xf32>
    %68 = arith.mulf %67, %36 : vector<4x256xf32>
    %69 = arith.addf %65, %68 : vector<4x256xf32>
    %c16_i32_19 = arith.constant 16 : i32
    %70 = tpu.dynamic_rotate %47 by %c16_i32_19 dim 1 : vector<4x256xf32>, i32 -> vector<4x256xf32>
    %cst_20 = arith.constant 0.000000e+00 : f32
    %71 = vector.shape_cast %24 : vector<1x256xi1> to vector<1x256xi1>
    %72 = vector.broadcast %71 : vector<1x256xi1> to vector<4x256xi1>
    %73 = vector.broadcast %cst_20 : f32 to vector<4x256xf32>
    %74 = arith.select %72, %73, %70 : vector<4x256xi1>, vector<4x256xf32>
    %75 = arith.addf %58, %74 : vector<4x256xf32>
    %c240_i32_21 = arith.constant 240 : i32
    %76 = tpu.dynamic_rotate %69 by %c240_i32_21 dim 1 : vector<4x256xf32>, i32 -> vector<4x256xf32>
    %cst_22 = arith.constant 0.000000e+00 : f32
    %77 = vector.shape_cast %26 : vector<1x256xi1> to vector<1x256xi1>
    %78 = vector.broadcast %77 : vector<1x256xi1> to vector<4x256xi1>
    %79 = vector.broadcast %cst_22 : f32 to vector<4x256xf32>
    %80 = arith.select %78, %79, %76 : vector<4x256xi1>, vector<4x256xf32>
    %81 = arith.addf %75, %80 : vector<4x256xf32>
    %c0_23 = arith.constant 0 : index
    %c9 = arith.constant 9 : index
    %82 = vector.load %arg3[%c0_23, %c9] : memref<4x16xf32, #tpu.memory_space<vmem>>, vector<4x1xf32>
    %83 = vector.broadcast %82 : vector<4x1xf32> to vector<4x256xf32>
    %84 = arith.addf %81, %83 : vector<4x256xf32>
    %cst_24 = arith.constant 0.000000e+00 : f32
    %85 = vector.broadcast %cst_24 : f32 to vector<4x256xf32>
    %86 = arith.maximumf %84, %85 : vector<4x256xf32>
    %c0_25 = arith.constant 0 : index
    %c0_26 = arith.constant 0 : index
    %c0_27 = arith.constant 0 : index
    %87 = vector.load %arg4[%c0_25, %c0_26, %c0_27] : memref<1x4x256xf32, #tpu.memory_space<vmem>>, vector<1x4x256xf32>
    %88 = vector.shape_cast %87 : vector<1x4x256xf32> to vector<4x256xf32>
    %89 = vector.shape_cast %86 : vector<4x256xf32> to vector<1x4x256xf32>
    tpu.vector_store %arg4[%c0_25, %c0_26, %c0_27], %89 {strides = array<i32>} : memref<1x4x256xf32, #tpu.memory_space<vmem>>, vector<1x4x256xf32>,
    return
  }
  func.func @transform_0(%arg0: i32, %arg1: i32) -> (i32, i32, i32) {
    %c0_i32 = arith.constant 0 : i32
    %c0_i32_0 = arith.constant 0 : i32
    return %arg0, %arg1, %c0_i32 : i32, i32, i32
  }
  func.func @transform_1(%arg0: i32, %arg1: i32) -> (i32, i32) {
    %c0_i32 = arith.constant 0 : i32
    %c0_i32_0 = arith.constant 0 : i32
    return %arg1, %c0_i32 : i32, i32
  }
  func.func @transform_2(%arg0: i32, %arg1: i32) -> (i32, i32, i32) {
    %c0_i32 = arith.constant 0 : i32
    %c0_i32_0 = arith.constant 0 : i32
    return %arg0, %arg1, %c0_i32 : i32, i32, i32
  }
}

</mosaic_0001>

<bundles_post_ra>
// kernel: tpu_custom_call.1
= control target key start
LH: loop header
LB: loop body
LE: loop exit
PB: predicated region body
PF: predicated region fallthrough
CT: control target
= control target key end

     0   :  { %7 = vsyncpa [#allocation3], 0  ;;  %s993_s0 = inlined_call_operand.hbm [shape: f32[2,4,256], index: 0, kind: input, shape index: {}]   ;;  %s994_s1 = inlined_call_operand.hbm [shape: f32[4,16], index: 1, kind: input, shape index: {}]   ;;  %s995_s2 = inlined_call_operand.hbm [shape: f32[2,4,256], index: 2, kind: output, shape index: {}]  }
   0x1   :  { %9 = vsyncpa [#allocation3 + $0x1], 0 }
   0x2   :  { %10 = vsyncpa [#allocation6], 0 }
   0x3   :  { %11 = vsyncpa [#allocation4], 0 }
   0x4   :  { %13 = vsyncpa [#allocation4 + $0x1], 0  ;;  %s818_s9 = smov 0   ;;  %s820_s10 = smov 0  }
   0x5   :  { %s822_s11 = smov 0   ;;  %s824_s12 = smov 0  }
   0x6   :  { %s826_s13 = smov 0   ;;  %s828_s14 = smov 0  }
   0x7 LB: > { %s523_s15 = sadd.s32 4294967295, %s786_s14   ;;  %s524_s16 = sadd.s32 4294967294, %s786_s14   ;;  %s786_s14 = sphi %s828_s14, %s19_s14   ;;  %s782_s13 = sphi %s826_s13, %s1007_s13   ;;  %s778_s12 = sphi %s824_s12, %s1006_s12   ;;  %s774_s11 = sphi %s822_s11, %s1005_s11   ;;  %s770_s10 = sphi %s820_s10, %s1004_s10   ;;  %s766_s9 = sphi %s818_s9, %s1003_s9  }
   0x8   : > { %p53_p0 = scmp.ne.s32.totalorder %s770_s10, %s766_s9  ;;  %p852_p1 = scmp.eq.s32.totalorder %s523_s15, 0 }
   0x9   : > { %p856_p2 = scmp.eq.s32.totalorder %s523_s15, 1  ;;  %p111_p3 = scmp.eq.s32.totalorder %s524_s16, 1 }
   0xa   : > { %p862_p4 = por %p852_p1, %p53_p0  ;;  %p525_p5 = scmp.ge.s32.totalorder %s786_s14, 1 }
   0xb   : > { %p867_p6 = por %p111_p3, %p53_p0  ;;  %p118_p7 = scmp.lt.s32.totalorder %s786_s14, 3 }
   0xc   : > { %s132_s23 = sshll.u32 %s994_s1, 4  ;;  %p527_p9 = scmp.ge.s32.totalorder %s786_s14, 2  ;;  %s133_s23 = int_to_ptr.hbm [resolvable:$true] %s132_s23 }
   0xd   : > { %p875_p8 = pnand %p525_p5, %p118_p7  ;;  %s788_s25 = smov [#allocation5]  }
   0xe   : > { %s134_s26 = sshll.u32 %s788_s25, 4  ;;  %s31_s27 = sadd.s32 1, %s782_s13  ;;  %s135_s26 = int_to_ptr.vmem [resolvable:$true] %s134_s26 }
   0xf   : > { %p550_p10 = pneg %p875_p8  ;;  %p33_p12 = scmp.ge.s32.totalorder %s31_s27, 2 }
  0x10   : > { %s40_s28 = sadd.s32 1, %s774_s11  ;;  %p47_p13 = scmp.ne.s32.totalorder %s774_s11, %s770_s10 }
  0x11   : > { %p551_p11 = pnand %p550_p10, %p852_p1  ;;  %p48_p0 = scmp.eq.s32.totalorder %s786_s14, 0 }
  0x12   : > { %s1009_s27 = smov (%p33_p12, %s31_s27), 0  ;;  %p897_p5 = por %p856_p2, %p47_p13 }
  0x13   : > { %553 = dma.hbm_to_vmem [thread:$0]  (!%p551_p11), %s133_s23, 64, %s135_s26, [#allocation6]  }
  0x14   : > { %p891_p3 = por %p48_p0, %p47_p13  ;;  %s35_s3 = ssub.s32 %s782_s13, %s1009_s27 }
  0x15   : > { %p563_p7 = scmp.lt.s32.totalorder %s786_s14, 2  ;;  %p38_p10 = scmp.eq.s32.totalorder %s35_s3, 0 }
  0x16   : > { %s145_s4 = sand.u32 1, %s774_s11   ;;  %s540_s7 = sshll.u32 %s782_s13, 3 }
  0x17   : > { %s528_s5 = sshll.u32 %s145_s4, 3  ;;  %s156_s16 = scalar_lea.hbm %s993_s0, %s540_s7 }
  0x18   : > { %s906_s6 = scalar_select %p38_p10, %s774_s11, %s40_s28  }
  0x19   : > { %s149_s21 = scalar_lea.vmem [#allocation2], %s528_s5  ;;  %s158_s18 = sshll.u32 %s156_s16, 4  ;;  %s159_s18 = int_to_ptr.hbm [resolvable:$true] %s158_s18 }
  0x1a   : > { %s160_s22 = sshll.u32 %s149_s21, 4  ;;  %p555_p2 = pnand %p563_p7, %p891_p3  ;;  %s161_s22 = int_to_ptr.vmem [resolvable:$true] %s160_s22 }
  0x1b   : > { %s146_s23 = scalar_lea.sflag [#allocation3], %s145_s4  ;;  %169 = sbr.rel (%p875_p8) target bundleno = 316 (0x13c), region = 28 }
  0x1c   : > { %557 = dma.hbm_to_vmem [thread:$0]  (!%p555_p2), %s159_s18, 128, %s161_s22, %s146_s23  }
  0x1d   : > { %s917_s25 = sand.u32 (!%p875_p8), 1, %s770_s10  }
  0x1e   : > { %s532_s26 = sshll.u32 (!%p875_p8), %s917_s25, 3  ;;  %s172_s28 = scalar_lea.sflag (!%p875_p8), [#allocation3], %s917_s25 }
  0x1f   : > { %s175_s3 = scalar_lea.vmem (!%p875_p8), [#allocation2], %s532_s26 }
  0x20   : > { %753 = dma.done.wait (%p862_p4), %s172_s28, 128  }
  0x21   : > { %755 = vsyncadd (%p862_p4), %s172_s28, 4294967168 }
  0x22   : > { %757 = dma.done.wait (%p852_p1), [#allocation6], 64  }
  0x23   : > { %759 = vsyncadd (%p852_p1), [#allocation6], 4294967232  ;;  %v789_v0 = vmov 7   ;;  %v790_v1 = vmov 0   ;;  %v791_v2 = vmov 6   ;;  %v202_v4 = vld [vmem:[%s175_s3] sm:$0xff]  ;;  %v203_v22 = vlaneseq }
  0x24   : > { %632 = vset.pattern.permute.xlu1 %v789_v0  ;;  %629 = vset.pattern.permute.xlu2 %v790_v1  ;;  %v325_v3 = vld [vmem:[#allocation5] sm:$0xf]  ;;  %239 = vst [vmem:[#allocation1] ss:$2 sm:$0xff] %v202_v4  ;;  %s792_s19 = smov 1   ;;  %v793_v8 = vmov 1  }
  0x25   : > { %631 = vset.pattern.permute.xlu0 %v791_v2  ;;  %v275_v5 = vld [vmem:[#allocation5] sm:$0xf]  ;;  %342 = vperm.xlu1 %632, %v325_v3   ;;  %v794_v9 = vmov 8   ;;  %s795_s17 = smov 127   ;;  %v796_v13 = vmov 2   ;;  %v797_v14 = vmov 3  }
  0x26   : > { %278 = vperm.xlu2 %629, %v275_v5   ;;  %v296_v10 = vld [vmem:[#allocation5] sm:$0xf]  ;;  %v798_v16 = vmov 4   ;;  %v799_v17 = vmov 5   ;;  %v938_v24 = vand.u32 127, %v203_v22  ;;  %v800_v26 = vmov 9  }
  0x27   : > { %v931_v15 = vld [vmem:[#allocation5] sm:$0xf]  ;;  %s801_s24 = smov 16   ;;  %s802_s29 = smov 112   ;;  %vm404_vm9 = vcmask 1043456  }
  0x28   : > { %v941_v28 = vadd.s32 128, %v938_v24  ;;  %v210_v29 = vand.u32 15, %v938_v24  ;;  %vm248_vm0 = vcmp.lt.s32.totalorder %v938_v24, 1  ;;  %vm266_vm3 = vcmp.lt.s32.totalorder %v938_v24, 127  ;;  %s541_s4 = sshll.u32 %s778_s12, 3  ;;  %s201_s15 = scalar_lea.vmem [#allocation7], %s532_s26 }
  0x29   : > { %vm234_vm6 = vcmp.lt.s32.totalorder %v938_v24, 16  ;;  %vm382_vm7 = vcmp.lt.s32.totalorder %v938_v24, 112  ;;  %s422_s8 = scalar_lea.hbm %s995_s2, %s541_s4  ;;  %s424_s16 = sshll.u32 %s201_s15, 4  ;;  %s425_s16 = int_to_ptr.vmem [resolvable:$true] %s424_s16 }
  0x2a   : > { %v217_v30 = vand.u32 15, %v941_v28  ;;  %vm230_vm1 = vcmp.eq.s32.totalorder %v210_v29, 0  ;;  %vm232_vm4 = vcmp.eq.s32.totalorder %v210_v29, 15  ;;  %vm237_vm8 = vcmp.ge.s32.totalorder %v941_v28, 240  ;;  %s426_s21 = sshll.u32 %s422_s8, 4  ;;  %s409_s12 = scalar_lea.sflag [#allocation4], %s917_s25  ;;  %s427_s21 = int_to_ptr.hbm [resolvable:$true] %s426_s21 }
  0x2b   : > { %v240_v6 = vld.sshfl [vmem:[#allocation1] sm:$0xff pattern:$0x75316420]  ;;  %v241_v7 = vld.sshfl [vmem:[#allocation1 + $0x8] sm:$0xff pattern:$0x75316420] }
  0x2c   : > { %244 = vrot.lane.b32.xlu0 %v240_v6, %s792_s19  ;;  %257 = vst [vmem:[#allocation1] ss:$2 sm:$0xff] %v202_v4  ;;  %vm231_vm2 = vcmp.eq.s32.totalorder %v217_v30, 0  ;;  %vm233_vm5 = vcmp.eq.s32.totalorder %v217_v30, 15  ;;  %s714_s22 = sshra.s32 %s427_s21, 4  ;;  %s720_s26 = scalar_lea.hbm %s995_s2, 16  ;;  %s715_s22 = int_to_ptr.hbm [resolvable:$true] %s714_s22 }
  0x2d   : > { %634 = vset.pattern.permute.xlu1 %v794_v9  ;;  %s716_s18 = scalar_lea.hbm %s715_s22, 8  ;;  %p721_p11 = scmp.lt.s32.totalorder %s715_s22, %s995_s2 }
  0x2e   : > { %630 = vset.pattern.permute.xlu2 %v793_v8  ;;  %p717_p1 = scmp.ne.s32.totalorder %s715_s22, %s716_s18  ;;  %p722_p12 = scmp.lt.s32.totalorder %s720_s26, %s716_s18 }
  0x2f   : > { %284 = vperm.xlu2 %630, %v275_v5  }
  0x30   : > { %p718_p4 = pnand %p717_p1, %p897_p5  ;;  %p723_p13 = por %p722_p12, %p721_p11 }
  0x32   : > { %p719_p8 = pneg %p718_p4 }
  0x33   : > { %v258_v11 = vld.sshfl [vmem:[#allocation1] sm:$0xff pattern:$0x75316420]  ;;  %v259_v12 = vld.sshfl [vmem:[#allocation1 + $0x8] sm:$0xff pattern:$0x75316420] }
  0x34   : > { %246 = vrot.lane.b32.xlu0 %v241_v7, %s792_s19  ;;  %262 = vrot.lane.b32.xlu1 %v258_v11, %s795_s17  ;;  %287 = vst [vmem:[#allocation1] ss:$2 sm:$0xff] %v202_v4  ;;  %p724_p0 = pnand %p723_p13, %p719_p8 }
  0x37   : > { %633 = vset.pattern.permute.xlu2 %v796_v13 }
  0x38   : > { %299 = vperm.xlu2 %633, %v296_v10  }
  0x3b   : > { %v288_v18 = vld.sshfl [vmem:[#allocation1] sm:$0xff pattern:$0x75316420]  ;;  %v289_v19 = vld.sshfl [vmem:[#allocation1 + $0x8] sm:$0xff pattern:$0x75316420] }
  0x3c   : > { %336 = vperm.xlu0 %631, %v325_v3   ;;  %264 = vrot.lane.b32.xlu1 %v259_v12, %s795_s17  ;;  %316 = vst [vmem:[#allocation1] ss:$2 sm:$0xff] %v202_v4 }
  0x40   : > { %635 = vset.pattern.permute.xlu2 %v797_v14 }
  0x41   : > { %307 = vperm.xlu2 %635, %v296_v10  }
  0x43   : > { %v934_v20 = vld.sshfl [vmem:[#allocation1] sm:$0xff pattern:$0x75316420]  ;;  %v936_v21 = vld.sshfl [vmem:[#allocation1 + $0x8] sm:$0xff pattern:$0x75316420] }
  0x44   : > { %636 = vset.pattern.permute.xlu0 %v798_v16  ;;  %357 = vperm.xlu1 %634, %v931_v15   ;;  %345 = vst [vmem:[#allocation1] ss:$2 sm:$0xff] %v202_v4 }
  0x45   : > { %313 = vperm.xlu0 %636, %v296_v10  }
  0x4b   : > { %v347_v53 = vld.sshfl [vmem:[#allocation1 + $0x8] sm:$0xff pattern:$0x75316420]  ;;  %v346_v57 = vld.sshfl [vmem:[#allocation1] sm:$0xff pattern:$0x75316420] }
  0x4c   : > { %637 = vset.pattern.permute.xlu1 %v799_v17 }
  0x4d   : > { %328 = vperm.xlu1 %637, %v325_v3   ;;  %639 = vset.pattern.permute.xlu0 %v800_v26 }
  0x55   : > { %638 = vset.pattern.permute.xlu1 %v800_v26 }
  0x80   : > { %v279_v23 = vpop.permute.xlu2 %278 }
  0x89   : > { %v285_v31 = vpop.permute.xlu2 %284 }
  0x8a   : > { %v292_v38 = vmul.f32 %v288_v18, %v285_v31  ;;  %v293_v39 = vmul.f32 %v289_v19, %v285_v31 }
  0x92   : > { %v300_v46 = vpop.permute.xlu2 %299 }
  0x97   : > { %v343_v25 = vpop.permute.xlu1 %342 }
  0x98   : > { %v351_v58 = vmul.f32 %v347_v53, %v343_v25  ;;  %v350_v61 = vmul.f32 %v346_v57, %v343_v25 }
  0x9b   : > { %v308_v4 = vpop.permute.xlu2 %307 }
  0x9e   : > { %v245_v27 = vpop.permute.xlu0 %244 }
  0xa6   : > { %v247_v32 = vpop.permute.xlu0 %246  ;;  %v263_v33 = vpop.permute.xlu1 %262 }
  0xa7   : > { %v249_v34 = vsel %vm248_vm0, %v245_v27, %v247_v32  ;;  %v250_v35 = vsel %vm248_vm0, %v247_v32, %v245_v27 }
  0xa8   : > { %v255_v36 = vsel %vm230_vm1, 0.0, %v250_v35  ;;  %v256_v37 = vsel %vm231_vm2, 0.0, %v249_v34 }
  0xa9   : > { %v281_v40 = vmul.f32 %v279_v23, %v255_v36  ;;  %v282_v41 = vmul.f32 %v279_v23, %v256_v37  ;;  %v310_v8 = vmul.f32 %v308_v4, %v255_v36  ;;  %v311_v9 = vmul.f32 %v308_v4, %v256_v37 }
  0xab   : > { %v295_v51 = vadd.f32 %v293_v39, %v282_v41  ;;  %v294_v52 = vadd.f32 %v292_v38, %v281_v40 }
  0xae   : > { %v265_v42 = vpop.permute.xlu1 %264  ;;  %v337_v43 = vpop.permute.xlu0 %336 }
  0xaf   : > { %v267_v44 = vsel %vm266_vm3, %v263_v33, %v265_v42  ;;  %v268_v45 = vsel %vm266_vm3, %v265_v42, %v263_v33  ;;  %v340_v54 = vmul.f32 %v337_v43, %v256_v37  ;;  %v339_v59 = vmul.f32 %v337_v43, %v255_v36 }
  0xb0   : > { %v273_v47 = vsel %vm232_vm4, 0.0, %v267_v44  ;;  %v274_v48 = vsel %vm233_vm5, 0.0, %v268_v45 }
  0xb1   : > { %v302_v49 = vmul.f32 %v300_v46, %v273_v47  ;;  %v303_v50 = vmul.f32 %v300_v46, %v274_v48  ;;  %v353_v62 = vadd.f32 %v351_v58, %v340_v54  ;;  %v352_v1 = vadd.f32 %v350_v61, %v339_v59 }
  0xb3   : > { %v305_v55 = vadd.f32 %v303_v50, %v295_v51  ;;  %v304_v56 = vadd.f32 %v302_v49, %v294_v52 }
  0xb5   : > { %366 = vrot.lane.b32.xlu1 %v305_v55, %s801_s24  ;;  %364 = vrot.lane.b32.xlu2 %v304_v56, %s801_s24 }
  0xb6   : > { %v358_v60 = vpop.permute.xlu1 %357 }
  0xb7   : > { %v360_v63 = vmul.f32 %v358_v60, %v273_v47  ;;  %v361_v0 = vmul.f32 %v358_v60, %v274_v48  ;;  %v314_v3 = vpop.permute.xlu0 %313 }
  0xb8   : > { %v321_v6 = vmul.f32 %v934_v20, %v314_v3  ;;  %v322_v7 = vmul.f32 %v936_v21, %v314_v3 }
  0xb9   : > { %v363_v2 = vadd.f32 %v361_v0, %v353_v62  ;;  %v362_v5 = vadd.f32 %v360_v63, %v352_v1 }
  0xba   : > { %v323_v11 = vadd.f32 %v321_v6, %v310_v8  ;;  %v324_v12 = vadd.f32 %v322_v7, %v311_v9 }
  0xbb   : > { %380 = vrot.lane.b32.xlu0 %v363_v2, %s802_s29 }
  0xbd   : > { %378 = vrot.lane.b32.xlu2 %v362_v5, %s802_s29  ;;  %394 = vperm.xlu1 %638, %v931_v15  }
  0xbf   : > { %v329_v10 = vpop.permute.xlu1 %328 }
  0xc0   : > { %v331_v13 = vmul.f32 %v329_v10, %v273_v47  ;;  %v332_v14 = vmul.f32 %v329_v10, %v274_v48 }
  0xc2   : > { %v333_v16 = vadd.f32 %v331_v13, %v323_v11  ;;  %v334_v17 = vadd.f32 %v332_v14, %v324_v12 }
 0x10f   : > { %v365_v18 = vpop.permute.xlu2 %364 }
 0x117   : > { %v379_v15 = vpop.permute.xlu2 %378 }
 0x127   : > { %v367_v19 = vpop.permute.xlu1 %366 }
 0x128   : > { %v369_v20 = vsel %vm234_vm6, %v367_v19, %v365_v18  ;;  %v368_v21 = vsel %vm234_vm6, %v365_v18, %v367_v19 }
 0x129   : > { %v374_v22 = vsel %vm234_vm6, 0.0, %v369_v20  ;;  %v377_v26 = vadd.f32 %v368_v21, %v334_v17 }
 0x12a   : > { %v376_v23 = vadd.f32 %v374_v22, %v333_v16 }
 0x12d   : > { %v381_v25 = vpop.permute.xlu0 %380 }
 0x12e   : > { %v383_v27 = vsel %vm382_vm7, %v379_v15, %v381_v25  ;;  %v384_v29 = vsel %vm382_vm7, %v381_v25, %v379_v15 }
 0x12f   : > { %v390_v30 = vsel %vm237_vm8, 0.0, %v384_v29  ;;  %v395_v31 = vpop.permute.xlu1 %394  ;;  %v391_v32 = vadd.f32 %v383_v27, %v376_v23 }
 0x130   : > { %v392_v33 = vadd.f32 %v390_v30, %v377_v26 }
 0x131   : > { %v397_v24 = vadd.f32 %v395_v31, %v391_v32 }
 0x132   : > { %v398_v34 = vadd.f32 %v395_v31, %v392_v33 }
 0x133   : > { %v399_v35 = vmax.f32 %v397_v24, 0.0 }
 0x134   : > { %v400_v28 = vmax.f32 %v398_v34, 0.0 }
 0x136   : > { %v403_v36 = vrot.slane %v400_v28, 4 }
 0x138   : > { %v405_v37 = vsel %vm404_vm9, %v399_v35, %v403_v36 }
 0x139   : > { %407 = vst [vmem:[%s201_s15] sm:$0xff] %v405_v37 }
 0x13a   : > { %727 = shalt.err (!%p724_p0)
}
 0x13b   : > { %548 = dma.vmem_to_hbm [thread:$0]  (%p897_p5), %s425_s16, 128, %s427_s21, %s409_s12  }
 0x13c PF: > { %s438_s25 = sand.u32 1, %s766_s9   ;;  %p559_p3 = pnand %p527_p9, %p867_p6 }
 0x13d   : > { %s439_s17 = scalar_lea.sflag [#allocation4], %s438_s25 }
 0x13e   : > { %p560_p7 = pneg %p559_p3 }
 0x140   : > { %761 = dma.done.wait (%p560_p7), %s439_s17, 128  }
 0x141   : > { %763 = vsyncadd (%p560_p7), %s439_s17, 4294967168  ;;  %s19_s14 = sadd.s32 1, %s786_s14   ;;  %s1003_s9 = smov %s770_s10 }
 0x142   : > { %p16_p10 = scmp.ge.s32.totalorder %s19_s14, 4   ;;  %s1004_s10 = smov %s774_s11 }
 0x143   : > { %s1005_s11 = smov %s906_s6  ;;  %s1006_s12 = smov %s782_s13 }
 0x144   : > { %s1007_s13 = smov %s1009_s27  ;;  %18 = sbr.rel (!%p16_p10) target bundleno = 7 (0x7), region = 78 }
 0x149   :  { %445 = vsyncpa [#allocation3], 1 }
 0x14a   :  { %447 = vsyncpa [#allocation3 + $0x1], 1 }
 0x14b   :  { %448 = vsyncpa [#allocation6], 1 }
 0x14c   :  { %449 = vsyncpa [#allocation4], 1 }
 0x14d   :  { %451 = vsyncpa [#allocation4 + $0x1], 1 }

</bundles_post_ra>
